<compile_context>
chip_gen: v6e
topology: v6e:2x2x1
jax: 0.10.0
libtpu: 0.0.40
codegen_flags: <defaults>
</compile_context>

<pallas_src>
import functools
import math

import numpy as np
import jax
import jax.numpy as jnp
from jax import lax
from jax.experimental import pallas as pl
from jax.experimental.pallas import tpu as pltpu

LANE = 128
MAX_TILE_M = 1024        # row-tile cap (perf review: 512-1024)
MAX_TILE_K = 2048        # reduction-tile cap (perf review: 1024-2048)


# ------------------------------ helpers --------------------------------------

def _round_up(x, m):
    return ((x + m - 1) // m) * m


def _pad_to(a, shape):
    pads = [(0, s - d) for s, d in zip(shape, a.shape)]
    return jnp.pad(a, pads)


def _vmem_limit_bytes():
    """Per-generation scoped-VMEM limit: ~3/4 of physical VMEM
    (~48 MiB on v7x, ~96 MiB on v5e/v6e), with a safe fallback."""
    cap = 64 * 1024 * 1024
    try:
        cap = int(pltpu.get_tpu_info().vmem_capacity_bytes)
    except Exception:
        pass
    return max(32 * 1024 * 1024, min((cap * 3) // 4, 96 * 1024 * 1024))


def _pick_tile(n_pad, cap):
    """Largest tile <= cap (power-of-two multiple of 128) dividing n_pad."""
    t = min(cap, n_pad)
    while t > LANE and (n_pad % t) != 0:
        t //= 2
    return max(t, LANE)


def _masked_log_softmax(y, n_valid):
    """log_softmax over the last dim, ignoring padded columns >= n_valid."""
    cols = lax.broadcasted_iota(jnp.int32, y.shape, dimension=1)
    masked = jnp.where(cols < n_valid, y, -jnp.inf)
    m = jnp.max(masked, axis=-1, keepdims=True)
    e = jnp.exp(masked - m)                       # exp(-inf) == 0 for padding
    s = jnp.sum(e, axis=-1, keepdims=True)
    return masked - m - jnp.log(s)


# ------------------------------ kernels ---------------------------------------

def _feat_transform_kernel(x_ref, wt_ref, o_ref):
    # XW1 = X @ W1^T (bf16 in, f32 MXU accumulate, bf16 out)
    o_ref[...] = jnp.dot(x_ref[...], wt_ref[...],
                         preferred_element_type=jnp.float32).astype(o_ref.dtype)


def feat_transform(x_bf16, wt_bf16, *, tile_m, vmem_limit):
    n_pad, fin_pad = x_bf16.shape
    fout_pad = wt_bf16.shape[1]
    return pl.pallas_call(
        _feat_transform_kernel,
        out_shape=jax.ShapeDtypeStruct((n_pad, fout_pad), jnp.bfloat16),
        grid_spec=pltpu.PrefetchScalarGridSpec(
            num_scalar_prefetch=0,
            grid=(n_pad // tile_m,),
            in_specs=[
                pl.BlockSpec((tile_m, fin_pad), lambda i: (i, 0)),
                pl.BlockSpec((fin_pad, fout_pad), lambda i: (0, 0)),
            ],
            out_specs=pl.BlockSpec((tile_m, fout_pad), lambda i: (i, 0)),
        ),
        compiler_params=pltpu.CompilerParams(
            dimension_semantics=("parallel",),
            vmem_limit_bytes=vmem_limit),
    )(x_bf16, wt_bf16)


def _agg_layer1_kernel(a_ref, xw_ref, b1_ref, w2t_ref, wft_ref, bf_ref,
                       xw2_ref, fr_ref, lfr_ref, acc_ref,
                       *, tile_k, xw_resident, n_fr_valid):
    """Layer-1 aggregation: acc += A_tile @ XW1_tile.  Epilogue fuses
    bias + ReLU, the layer-2 feature transform (h @ W2^T), and the fakereal
    head + its log_softmax -> h never touches HBM."""
    k = pl.program_id(1)

    @pl.when(k == 0)
    def _():
        acc_ref[...] = jnp.zeros_like(acc_ref)

    if xw_resident:
        row0 = pl.multiple_of(k * tile_k, tile_k)
        xw_blk = xw_ref[pl.ds(row0, tile_k), :]
    else:
        xw_blk = xw_ref[...]

    acc_ref[...] += jnp.dot(a_ref[...], xw_blk,
                            preferred_element_type=jnp.float32)

    @pl.when(k == pl.num_programs(1) - 1)
    def _():
        # conv1 bias + ReLU.
        # TODO(synk): F.dropout(training=True) is stochastic; eval-mode identity here.
        h = jnp.maximum(acc_ref[...] + b1_ref[...], 0.0).astype(jnp.bfloat16)
        # fused layer-2 feature transform: saves a kernel launch and the full
        # HBM round-trip of h (free filler under the A_hat DMA).
        xw2_ref[...] = jnp.dot(h, w2t_ref[...],
                               preferred_element_type=jnp.float32
                               ).astype(xw2_ref.dtype)
        # fused fake/real head: Linear(nhid, 2) + log_softmax over 2 cols.
        fr = jnp.dot(h, wft_ref[...],
                     preferred_element_type=jnp.float32) + bf_ref[...]
        fr_ref[...] = fr
        lfr_ref[...] = _masked_log_softmax(fr, n_fr_valid)


def agg_layer1(a_q, xw1, b1p, w2t, wft, bfp, *, tile_m, tile_k,
               xw_resident, n_fr_valid, vmem_limit):
    n_pad = a_q.shape[0]
    fhid_pad = xw1.shape[1]
    fcls_pad = w2t.shape[1]
    ffr_pad = wft.shape[1]

    if xw_resident:
        # full-array, constant-index block: DMA'd once, stays VMEM-resident.
        xw_spec = pl.BlockSpec((n_pad, fhid_pad), lambda i, k: (0, 0))
    else:
        xw_spec = pl.BlockSpec((tile_k, fhid_pad), lambda i, k: (k, 0))

    kernel = functools.partial(_agg_layer1_kernel, tile_k=tile_k,
                               xw_resident=xw_resident, n_fr_valid=n_fr_valid)
    return pl.pallas_call(
        kernel,
        out_shape=(
            jax.ShapeDtypeStruct((n_pad, fcls_pad), jnp.bfloat16),   # xw2 = h @ W2^T
            jax.ShapeDtypeStruct((n_pad, ffr_pad), jnp.float32),     # fakeorreal
            jax.ShapeDtypeStruct((n_pad, ffr_pad), jnp.float32),     # log_softmax(fake)
        ),
        grid_spec=pltpu.PrefetchScalarGridSpec(
            num_scalar_prefetch=0,
            grid=(n_pad // tile_m, n_pad // tile_k),
            in_specs=[
                pl.BlockSpec((tile_m, tile_k), lambda i, k: (i, k)),      # A_hat tile
                xw_spec,                                                  # XW1
                pl.BlockSpec((1, fhid_pad), lambda i, k: (0, 0)),         # b1
                pl.BlockSpec((fhid_pad, fcls_pad), lambda i, k: (0, 0)),  # W2^T
                pl.BlockSpec((fhid_pad, ffr_pad), lambda i, k: (0, 0)),   # Wf^T
                pl.BlockSpec((1, ffr_pad), lambda i, k: (0, 0)),          # bf
            ],
            out_specs=(
                pl.BlockSpec((tile_m, fcls_pad), lambda i, k: (i, 0)),
                pl.BlockSpec((tile_m, ffr_pad), lambda i, k: (i, 0)),
                pl.BlockSpec((tile_m, ffr_pad), lambda i, k: (i, 0)),
            ),
            scratch_shapes=[pltpu.VMEM((tile_m, fhid_pad), jnp.float32)],
        ),
        compiler_params=pltpu.CompilerParams(
            dimension_semantics=("parallel", "arbitrary"),
            vmem_limit_bytes=vmem_limit),
    )(a_q, xw1, b1p, w2t, wft, bfp)


def _agg_layer2_kernel(a_ref, xw_ref, b2_ref, logits_ref, lsm_ref, acc_ref,
                       *, tile_k, xw_resident, n_cls_valid):
    """Layer-2 aggregation: acc += A_tile @ XW2_tile; epilogue does bias +
    masked log_softmax."""
    k = pl.program_id(1)

    @pl.when(k == 0)
    def _():
        acc_ref[...] = jnp.zeros_like(acc_ref)

    if xw_resident:
        row0 = pl.multiple_of(k * tile_k, tile_k)
        xw_blk = xw_ref[pl.ds(row0, tile_k), :]
    else:
        xw_blk = xw_ref[...]

    acc_ref[...] += jnp.dot(a_ref[...], xw_blk,
                            preferred_element_type=jnp.float32)

    @pl.when(k == pl.num_programs(1) - 1)
    def _():
        logits = acc_ref[...] + b2_ref[...]
        logits_ref[...] = logits
        lsm_ref[...] = _masked_log_softmax(logits, n_cls_valid)


def agg_layer2(a_q, xw2, b2p, *, tile_m, tile_k, xw_resident,
               n_cls_valid, vmem_limit):
    n_pad = a_q.shape[0]
    fcls_pad = xw2.shape[1]

    if xw_resident:
        xw_spec = pl.BlockSpec((n_pad, fcls_pad), lambda i, k: (0, 0))
    else:
        xw_spec = pl.BlockSpec((tile_k, fcls_pad), lambda i, k: (k, 0))

    kernel = functools.partial(_agg_layer2_kernel, tile_k=tile_k,
                               xw_resident=xw_resident, n_cls_valid=n_cls_valid)
    return pl.pallas_call(
        kernel,
        out_shape=(
            jax.ShapeDtypeStruct((n_pad, fcls_pad), jnp.float32),    # logits
            jax.ShapeDtypeStruct((n_pad, fcls_pad), jnp.float32),    # log_softmax
        ),
        grid_spec=pltpu.PrefetchScalarGridSpec(
            num_scalar_prefetch=0,
            grid=(n_pad // tile_m, n_pad // tile_k),
            in_specs=[
                pl.BlockSpec((tile_m, tile_k), lambda i, k: (i, k)),  # A_hat tile
                xw_spec,                                              # XW2
                pl.BlockSpec((1, fcls_pad), lambda i, k: (0, 0)),     # b2
            ],
            out_specs=(
                pl.BlockSpec((tile_m, fcls_pad), lambda i, k: (i, 0)),
                pl.BlockSpec((tile_m, fcls_pad), lambda i, k: (i, 0)),
            ),
            scratch_shapes=[pltpu.VMEM((tile_m, fcls_pad), jnp.float32)],
        ),
        compiler_params=pltpu.CompilerParams(
            dimension_semantics=("parallel", "arbitrary"),
            vmem_limit_bytes=vmem_limit),
    )(a_q, xw2, b2p)


# ------------------------- plain-JAX / numpy glue -----------------------------

def build_normalized_adj(edge_index, num_nodes):
    """Reproduces gcn_norm() + 'add' aggregation as a dense matrix.

    Matches the reference exactly, including its use of deg_inv_sqrt[col]
    *twice* (norm = dinv[col] * w * dinv[col]) and add_remaining_self_loops
    (drop existing self loops, append one unit self loop per node).
    conv2 re-normalizes the edge_index returned by conv1, which yields the
    SAME matrix, so one A_hat serves both layers.
    """
    row, col = np.asarray(edge_index[0]), np.asarray(edge_index[1])
    mask = row != col
    loop = np.arange(num_nodes, dtype=row.dtype)
    row = np.concatenate([row[mask], loop])
    col = np.concatenate([col[mask], loop])
    ew = np.ones(row.shape[0], dtype=np.float32)

    deg = np.zeros(num_nodes, dtype=np.float32)
    np.add.at(deg, col, ew)
    with np.errstate(divide="ignore"):
        dinv = deg ** -0.5
    dinv[np.isinf(dinv)] = 0.0
    norm = dinv[col] * ew * dinv[col]

    a_hat = np.zeros((num_nodes, num_nodes), dtype=np.float32)
    np.add.at(a_hat, (col, row), norm)            # out[i] += norm_e * x[row_e]
    return a_hat


def glorot(key, shape):
    fan_out, fan_in = shape
    stdv = math.sqrt(6.0 / (fan_in + fan_out))
    return jax.random.uniform(key, shape, jnp.float32, -stdv, stdv)


def stand_gcn_classifier_forward(x, edge_index, params, num_nodes):
    """StandGCNClassifier.forward -> (logits, fakeorreal, x_class, x_fakereal)."""
    w1, b1, w2, b2, wf, bf = params
    n = num_nodes
    nfeat = x.shape[1]
    nhid = w1.shape[0]
    nclass = w2.shape[0]

    # tiling: N padded to a multiple of 128; tiles always divide n_pad.
    n_pad = _round_up(n, LANE)
    tile_m = _pick_tile(n_pad, MAX_TILE_M)
    tile_k = _pick_tile(n_pad, MAX_TILE_K)
    # v7x: give the parallel row axis >= 2 tiles so both TensorCores get work.
    if n_pad // tile_m < 2 and tile_m > LANE:
        tile_m //= 2

    fin_pad = _round_up(nfeat, LANE)
    fhid_pad = _round_up(nhid, LANE)
    fcls_pad = _round_up(nclass, LANE)
    ffr_pad = _round_up(2, LANE)

    vmem_limit = _vmem_limit_bytes()
    # keep XW fully VMEM-resident in the aggregation kernels when its
    # (double-buffered) footprint is a small fraction of the VMEM budget.
    xw_bytes = 2 * n_pad * max(fhid_pad, fcls_pad) * 2
    xw_resident = xw_bytes <= vmem_limit // 4

    # dense normalized adjacency: built once, cast to bf16 on the host so only
    # n_pad^2 * 2 bytes cross host->HBM and no on-device convert pass is needed.
    # TODO(synk): for large/real graphs replace dense A_hat with a
    # scalar-prefetch CSR gather SpMM (O(E) HBM instead of O(N^2)).
    # TODO(synk): per-generation A_hat narrowing (fp8-e4m3 on v7x, per-row int8
    # on v5e/v6e) would ~halve the dominant HBM stream; needs accuracy
    # validation, so it is not enabled here.
    a_hat = build_normalized_adj(edge_index, n)
    a_pad = np.zeros((n_pad, n_pad), dtype=jnp.bfloat16)
    a_pad[:n, :n] = a_hat.astype(jnp.bfloat16)
    a_q = jnp.asarray(a_pad)

    # zero-padded, lane-dense operands (bf16 matmul inputs, f32 biases)
    x_bf = _pad_to(x.astype(jnp.bfloat16), (n_pad, fin_pad))
    w1t = _pad_to(w1.T.astype(jnp.bfloat16), (fin_pad, fhid_pad))
    b1p = _pad_to(b1.reshape(1, -1).astype(jnp.float32), (1, fhid_pad))
    w2t = _pad_to(w2.T.astype(jnp.bfloat16), (fhid_pad, fcls_pad))
    b2p = _pad_to(b2.reshape(1, -1).astype(jnp.float32), (1, fcls_pad))
    wft = _pad_to(wf.T.astype(jnp.bfloat16), (fhid_pad, ffr_pad))
    bfp = _pad_to(bf.reshape(1, -1).astype(jnp.float32), (1, ffr_pad))

    # layer 1 feature transform (hoisted out of the A_hat reduction)
    xw1 = feat_transform(x_bf, w1t, tile_m=tile_m, vmem_limit=vmem_limit)
    # layer-1 aggregation (+bias+ReLU) with fused layer-2 feature transform,
    # fakereal head and its log_softmax in the epilogue.
    xw2, fakeorreal, x_fakereal = agg_layer1(
        a_q, xw1, b1p, w2t, wft, bfp, tile_m=tile_m, tile_k=tile_k,
        xw_resident=xw_resident, n_fr_valid=2, vmem_limit=vmem_limit)
    # layer-2 aggregation + bias + log_softmax.
    logits, x_class = agg_layer2(
        a_q, xw2, b2p, tile_m=tile_m, tile_k=tile_k,
        xw_resident=xw_resident, n_cls_valid=nclass, vmem_limit=vmem_limit)

    return (logits[:n, :nclass], fakeorreal[:n, :2],
            x_class[:n, :nclass], x_fakereal[:n, :2])


# ---------------------------------- main --------------------------------------

if __name__ == "__main__":
    N, NFEAT, NHID, NCLASS, E = 8, 16, 32, 4, 20

    key = jax.random.PRNGKey(0)
    kx, kw1, kw2, kwf, kbf = jax.random.split(key, 5)

    # deterministic inputs
    x = jax.random.normal(kx, (N, NFEAT), jnp.float32)
    rng = np.random.default_rng(0)
    edge_index = rng.integers(0, N, size=(2, E)).astype(np.int32)

    # deterministic parameters (glorot GCN weights, zero biases; fakereal head
    # with normal(std=0.05) weight as in reset_parameters and Linear-style bias)
    w1 = glorot(kw1, (NHID, NFEAT))
    b1 = jnp.zeros((NHID,), jnp.float32)
    w2 = glorot(kw2, (NCLASS, NHID))
    b2 = jnp.zeros((NCLASS,), jnp.float32)
    wf = 0.05 * jax.random.normal(kwf, (2, NHID), jnp.float32)
    bound = 1.0 / math.sqrt(NHID)
    bf = jax.random.uniform(kbf, (2,), jnp.float32, -bound, bound)

    outs = stand_gcn_classifier_forward(
        x, edge_index, (w1, b1, w2, b2, wf, bf), N)
    logits, fakeorreal, x_class, x_fakereal = jax.block_until_ready(outs)

    assert logits.shape == (N, NCLASS) and logits.dtype == jnp.float32
    assert x_class.shape == (N, NCLASS)
    assert fakeorreal.shape == (N, 2) and x_fakereal.shape == (N, 2)

    # f32 dense reference (bf16 matmuls in the kernel -> loose tolerance)
    a_ref = jnp.asarray(build_normalized_adj(edge_index, N))
    h_ref = jnp.maximum(a_ref @ (x @ w1.T) + b1, 0.0)
    logits_ref = a_ref @ (h_ref @ w2.T) + b2
    fr_ref = h_ref @ wf.T + bf
    np.testing.assert_allclose(np.asarray(logits), np.asarray(logits_ref),
                               rtol=5e-2, atol=5e-2)
    np.testing.assert_allclose(np.asarray(fakeorreal), np.asarray(fr_ref),
                               rtol=5e-2, atol=5e-2)
    np.testing.assert_allclose(np.asarray(x_class),
                               np.asarray(jax.nn.log_softmax(logits_ref, axis=1)),
                               rtol=5e-2, atol=5e-2)
    np.testing.assert_allclose(np.asarray(x_fakereal),
                               np.asarray(jax.nn.log_softmax(fr_ref, axis=1)),
                               rtol=5e-2, atol=5e-2)

    print("KERNEL_OK")
</pallas_src>

<mosaic_0001>
module attributes {stable_mosaic.version = 11 : i64} {
  func.func @_feat_transform_kernel(%arg0: i32, %arg1: memref<128x128xbf16, #tpu.memory_space<vmem>>, %arg2: memref<128x128xbf16, #tpu.memory_space<vmem>>, %arg3: memref<128x128xbf16, #tpu.memory_space<vmem>>) attributes {dimension_semantics = [#tpu.dimension_semantics<parallel>], iteration_bounds = array<i64: 1>, scalar_prefetch = 0 : i64, scratch_operands = 0 : i64, tpu.core_type = #tpu.core_type<tc>, window_params = [{transform_indices = @transform_0, window_bounds = array<i64: 128, 128>}, {pipeline_mode = #tpu.pipeline_mode<synchronous>, transform_indices = @transform_1, window_bounds = array<i64: 128, 128>}, {transform_indices = @transform_2, window_bounds = array<i64: 128, 128>}]} {
    %c0 = arith.constant 0 : index
    %c0_0 = arith.constant 0 : index
    %0 = vector.load %arg1[%c0, %c0_0] : memref<128x128xbf16, #tpu.memory_space<vmem>>, vector<128x128xbf16>
    %c0_1 = arith.constant 0 : index
    %c0_2 = arith.constant 0 : index
    %1 = vector.load %arg2[%c0_1, %c0_2] : memref<128x128xbf16, #tpu.memory_space<vmem>>, vector<128x128xbf16>
    %cst = arith.constant dense<0.000000e+00> : vector<128x128xf32>
    %2 = tpu.matmul %0, %1, %cst {dimension_numbers = #tpu.dot_dimension_numbers<[1], [0], [0], [1], [0, 0, 1, 1], [], []>} : vector<128x128xbf16>, vector<128x128xbf16>, vector<128x128xf32> -> vector<128x128xf32>
    %3 = arith.truncf %2 : vector<128x128xf32> to vector<128x128xbf16>
    %c0_3 = arith.constant 0 : index
    %c0_4 = arith.constant 0 : index
    %4 = vector.load %arg3[%c0_3, %c0_4] : memref<128x128xbf16, #tpu.memory_space<vmem>>, vector<128x128xbf16>
    tpu.vector_store %arg3[%c0_3, %c0_4], %3 {strides = array<i32>} : memref<128x128xbf16, #tpu.memory_space<vmem>>, vector<128x128xbf16>,
    return
  }
  func.func @transform_0(%arg0: i32) -> (i32, i32) {
    %c0_i32 = arith.constant 0 : i32
    %c0_i32_0 = arith.constant 0 : i32
    return %arg0, %c0_i32 : i32, i32
  }
  func.func @transform_1(%arg0: i32) -> (i32, i32) {
    %c0_i32 = arith.constant 0 : i32
    %c0_i32_0 = arith.constant 0 : i32
    %c0_i32_1 = arith.constant 0 : i32
    return %c0_i32, %c0_i32_0 : i32, i32
  }
  func.func @transform_2(%arg0: i32) -> (i32, i32) {
    %c0_i32 = arith.constant 0 : i32
    %c0_i32_0 = arith.constant 0 : i32
    return %arg0, %c0_i32 : i32, i32
  }
}

</mosaic_0001>

<bundles_post_ra>
// kernel: tpu_custom_call.1
= control target key start
LH: loop header
LB: loop body
LE: loop exit
PB: predicated region body
PF: predicated region fallthrough
CT: control target
= control target key end

     0   :  { %7 = vsyncpa [#allocation3], 0  ;;  %s648_s0 = inlined_call_operand.hbm [shape: bf16[128,128], index: 0, kind: input, shape index: {}]   ;;  %s649_s1 = inlined_call_operand.hbm [shape: bf16[128,128], index: 1, kind: input, shape index: {}]   ;;  %s650_s2 = inlined_call_operand.hbm [shape: bf16[128,128], index: 2, kind: output, shape index: {}]  }
   0x1   :  { %8 = vsyncpa [#allocation6], 0 }
   0x2   :  { %9 = vsyncpa [#allocation4], 0  ;;  %s610_s9 = smov [#allocation2]  }
   0x3   :  { %s15_s10 = sshll.u32 %s610_s9, 4  ;;  %s16_s10 = int_to_ptr.vmem [resolvable:$true] %s15_s10 }
   0x4   :  { %s552_s11 = scalar_lea.vmem %s16_s10, 1024  ;;  %p557_p1 = scmp.lt.s32.totalorder %s16_s10, %s16_s10 }
   0x5   :  { %p553_p0 = scmp.ne.s32.totalorder %s16_s10, %s552_s11  ;;  %p558_p2 = scmp.lt.s32.totalorder %s552_s11, %s552_s11 }
   0x7   :  { %p559_p3 = por %p558_p2, %p557_p1 }
   0x9   :  { %p560_p4 = pnand %p559_p3, %p553_p0 }
   0xb   :  { %563 = shalt.err (!%p560_p4)
}
   0xc   :  { %s611_s12 = smov 64   ;;  %s612_s13 = smov 4  }
   0xd   :  { %21 = dma.hbm_to_vmem [thread:$0]  %s648_s0, 1024, %s16_s10, [#allocation3], %s611_s12, %s611_s12, %s612_s13  }
   0xe   :  { %s613_s16 = smov [#allocation5]  }
   0xf   :  { %s27_s17 = sshll.u32 %s613_s16, 4  ;;  %s28_s17 = int_to_ptr.vmem [resolvable:$true] %s27_s17 }
  0x10   :  { %s572_s18 = scalar_lea.vmem %s28_s17, 1024  ;;  %p577_p6 = scmp.lt.s32.totalorder %s28_s17, %s28_s17 }
  0x11   :  { %p573_p5 = scmp.ne.s32.totalorder %s28_s17, %s572_s18  ;;  %p578_p7 = scmp.lt.s32.totalorder %s572_s18, %s572_s18 }
  0x13   :  { %p579_p8 = por %p578_p7, %p577_p6 }
  0x15   :  { %p580_p9 = pnand %p579_p8, %p573_p5 }
  0x17   :  { %583 = shalt.err (!%p580_p9)
}
  0x18   :  { %33 = dma.hbm_to_vmem [thread:$0]  %s649_s1, 1024, %s28_s17, [#allocation6], %s611_s12, %s611_s12, %s612_s13  }
  0x19   :  { %604 = dma.done.wait [#allocation3], 1024  }
  0x1a   :  { %605 = vsyncadd [#allocation3], 4294966272 }
  0x1b   :  { %606 = dma.done.wait [#allocation6], 1024  }
  0x1c   :  { %607 = vsyncadd [#allocation6], 4294966272  ;;  %v528_v0 = vld [vmem:[#allocation5 + $0x38] sm:$0xff]   ;;  %v529_v1 = vld [vmem:[#allocation5 + $0x30] sm:$0xff]   ;;  %s614_s0 = smov [#allocation7]  }
  0x1d   :  { %475 = vmatprep.subr.bf16.mxu0 %v528_v0  ;;  %507 = vmatprep.subr.bf16.mxu1 %v528_v0  ;;  %v530_v2 = vld [vmem:[#allocation5 + $0x28] sm:$0xff]   ;;  %v531_v3 = vld [vmem:[#allocation5 + $0x20] sm:$0xff]   ;;  %v532_v6 = vld [vmem:[#allocation5 + $0x18] sm:$0xff]   ;;  %s351_s1 = sshll.u32 %s614_s0, 4  ;;  %s352_s1 = int_to_ptr.vmem [resolvable:$true] %s351_s1 }
  0x1e   :  { %476 = vmatpush3.bf16.msra.mxu0 %v528_v0  ;;  %515 = vmatpush3.bf16.msra.mxu1 %v528_v0  ;;  %v536_v4 = vld [vmem:[#allocation2] sm:$0xff]   ;;  %v533_v7 = vld [vmem:[#allocation5 + $0x10] sm:$0xff]   ;;  %v534_v8 = vld [vmem:[#allocation5 + $0x8] sm:$0xff]   ;;  %s584_s21 = scalar_lea.vmem %s352_s1, 1024  ;;  %p589_p11 = scmp.lt.s32.totalorder %s352_s1, %s352_s1 }
  0x1f   :  { %477 = vmatprep.subr.bf16.mxu0 %v529_v1  ;;  %508 = vmatprep.subr.bf16.mxu1 %v529_v1  ;;  %v537_v5 = vld [vmem:[#allocation2 + $0x20] sm:$0xff]   ;;  %v538_v10 = vld [vmem:[#allocation2 + $0x8] sm:$0xff]   ;;  %v540_v12 = vld [vmem:[#allocation2 + $0x10] sm:$0xff]   ;;  %p585_p10 = scmp.ne.s32.totalorder %s352_s1, %s584_s21  ;;  %p590_p12 = scmp.lt.s32.totalorder %s584_s21, %s584_s21 }
  0x20   :  { %491 = vmatprep.mubr.bf16.mxu0 %v536_v4  ;;  %499 = vmatprep.mubr.bf16.mxu1 %v537_v5  ;;  %v535_v9 = vld [vmem:[#allocation5] sm:$0xff]   ;;  %v539_v11 = vld [vmem:[#allocation2 + $0x28] sm:$0xff]   ;;  %v541_v13 = vld [vmem:[#allocation2 + $0x30] sm:$0xff]  }
  0x21   :  { %v542_v14 = vld [vmem:[#allocation2 + $0x18] sm:$0xff]   ;;  %p591_p13 = por %p590_p12, %p589_p11 }
  0x22   :  { %478 = vmatpush3.bf16.msra.mxu0 %v529_v1  ;;  %516 = vmatpush3.bf16.msra.mxu1 %v529_v1  ;;  %v543_v15 = vld [vmem:[#allocation2 + $0x38] sm:$0xff]  }
  0x23   :  { %479 = vmatprep.subr.bf16.mxu0 %v530_v2  ;;  %509 = vmatprep.subr.bf16.mxu1 %v530_v2  ;;  %p592_p0 = pnand %p591_p13, %p585_p10 }
  0x26   :  { %480 = vmatpush3.bf16.msra.mxu0 %v530_v2  ;;  %517 = vmatpush3.bf16.msra.mxu1 %v530_v2 }
  0x27   :  { %481 = vmatprep.subr.bf16.mxu0 %v531_v3  ;;  %510 = vmatprep.subr.bf16.mxu1 %v531_v3 }
  0x2a   :  { %482 = vmatpush3.bf16.msra.mxu0 %v531_v3  ;;  %518 = vmatpush3.bf16.msra.mxu1 %v531_v3 }
  0x2b   :  { %483 = vmatprep.subr.bf16.mxu0 %v532_v6  ;;  %511 = vmatprep.subr.bf16.mxu1 %v532_v6 }
  0x2e   :  { %484 = vmatpush3.bf16.msra.mxu0 %v532_v6  ;;  %519 = vmatpush3.bf16.msra.mxu1 %v532_v6 }
  0x2f   :  { %485 = vmatprep.subr.bf16.mxu0 %v533_v7  ;;  %512 = vmatprep.subr.bf16.mxu1 %v533_v7 }
  0x32   :  { %486 = vmatpush3.bf16.msra.mxu0 %v533_v7  ;;  %520 = vmatpush3.bf16.msra.mxu1 %v533_v7 }
  0x33   :  { %487 = vmatprep.subr.bf16.mxu0 %v534_v8  ;;  %513 = vmatprep.subr.bf16.mxu1 %v534_v8 }
  0x36   :  { %488 = vmatpush3.bf16.msra.mxu0 %v534_v8  ;;  %521 = vmatpush3.bf16.msra.mxu1 %v534_v8 }
  0x37   :  { %489 = vmatprep.subr.bf16.mxu0 %v535_v9  ;;  %514 = vmatprep.subr.bf16.mxu1 %v535_v9 }
  0x3a   :  { %490 = vmatpush3.bf16.msra.mxu0 %v535_v9  ;;  %522 = vmatpush3.bf16.msra.mxu1 %v535_v9 }
  0x3d   :  { %492 = vmatmul.mubr.bf16.vlgmr.msra.gmra.mxu0 %v538_v10  ;;  %500 = vmatmul.mubr.bf16.vlgmr.msra.gmra.mxu1 %v539_v11 }
  0x3e   :  { %495 = vmatprep.mubr.bf16.mxu0 %v540_v12  ;;  %503 = vmatprep.mubr.bf16.mxu1 %v541_v13 }
  0x45   :  { %496 = vmatmul.mubr.bf16.gmra.mxu0 %v542_v14  ;;  %504 = vmatmul.mubr.bf16.gmra.mxu1 %v543_v15 }
  0xfd   :  { %v493_v16 = vpop.f32.mrf.mxu0  ;;  %v501_v17 = vpop.f32.mrf.mxu1 }
  0xff   :  { %v203_v18 = vpop.f32.mrf.mxu0  ;;  %v235_v19 = vpop.f32.mrf.mxu1 }
 0x101   :  { %v494_v20 = vpop.f32.mrf.mxu0  ;;  %v502_v21 = vpop.f32.mrf.mxu1 }
 0x102   :  { %v420_v22 = vpack.c.bf16 %v494_v20, %v493_v16  ;;  %v440_v23 = vpack.c.bf16 %v502_v21, %v501_v17 }
 0x103   :  { %v206_v24 = vpop.f32.mrf.mxu0  ;;  %v238_v25 = vpop.f32.mrf.mxu1 }
 0x104   :  { %452 = vst [vmem:[#allocation7 + $0x8] sm:$0xff] %v420_v22   ;;  %456 = vst [vmem:[#allocation7 + $0x28] sm:$0xff] %v440_v23   ;;  %v415_v26 = vpack.c.bf16 %v206_v24, %v203_v18  ;;  %v435_v27 = vpack.c.bf16 %v238_v25, %v235_v19 }
 0x105   :  { %v497_v28 = vpop.f32.mrf.mxu0  ;;  %v505_v29 = vpop.f32.mrf.mxu1 }
 0x106   :  { %416 = vst [vmem:[#allocation7] sm:$0xff] %v415_v26   ;;  %455 = vst [vmem:[#allocation7 + $0x20] sm:$0xff] %v435_v27  }
 0x107   :  { %v219_v30 = vpop.f32.mrf.mxu0  ;;  %v251_v31 = vpop.f32.mrf.mxu1 }
 0x109   :  { %v498_v32 = vpop.f32.mrf.mxu0  ;;  %v506_v33 = vpop.f32.mrf.mxu1 }
 0x10a   :  { %v430_v34 = vpack.c.bf16 %v498_v32, %v497_v28  ;;  %v450_v35 = vpack.c.bf16 %v506_v33, %v505_v29 }
 0x10b   :  { %v222_v36 = vpop.f32.mrf.mxu0  ;;  %v254_v37 = vpop.f32.mrf.mxu1 }
 0x10c   :  { %454 = vst [vmem:[#allocation7 + $0x18] sm:$0xff] %v430_v34   ;;  %458 = vst [vmem:[#allocation7 + $0x38] sm:$0xff] %v450_v35   ;;  %v425_v38 = vpack.c.bf16 %v222_v36, %v219_v30  ;;  %v445_v39 = vpack.c.bf16 %v254_v37, %v251_v31 }
 0x10e   :  { %453 = vst [vmem:[#allocation7 + $0x10] sm:$0xff] %v425_v38   ;;  %457 = vst [vmem:[#allocation7 + $0x30] sm:$0xff] %v445_v39  }
 0x10f   :  { %595 = shalt.err (!%p592_p0)
}
 0x110   :  { %357 = dma.vmem_to_hbm [thread:$0]  %s352_s1, 1024, %s650_s2, [#allocation4], %s611_s12, %s611_s12, %s612_s13  }
 0x111   :  { %608 = dma.done.wait [#allocation4], 1024  }
 0x112   :  { %609 = vsyncadd [#allocation4], 4294966272 }
 0x113   :  { %361 = vsyncpa [#allocation3], 1 }
 0x114   :  { %362 = vsyncpa [#allocation6], 1 }
 0x115   :  { %363 = vsyncpa [#allocation4], 1 }

</bundles_post_ra>
